<compile_context>
chip_gen: v5e
topology: v5e:2x2
jax: 0.10.0
libtpu: 0.0.40
codegen_flags: <defaults>
</compile_context>

<pallas_src>
import functools

import jax
import jax.numpy as jnp
from jax import lax
from jax.experimental import pallas as pl
from jax.experimental.pallas import tpu as pltpu

NP = 128  # padded node count (lane dim);  requires n_node <= NP
MP = 128  # padded number of upper-triangular edge slots;  requires m <= MP
TP = 8    # padded number of target nodes


def fused_loss_kernel(n_node, vals_row_ref, rows_row_ref, cols_row_ref,
                      rows_col_ref, cols_col_ref, tgt_ref, out_ref):
    f32, bf16 = jnp.float32, jnp.bfloat16
    vals_row = vals_row_ref[...]                                    # (1, MP) f32, {0,1}

    # ---- adjacency matrix on the MXU (replaces XLA scatter + transpose + diag + pad) ----
    # node-major weighted one-hots:  Rv[i, k] = v_k * [rows_k == i]
    sub_iota = lax.broadcasted_iota(jnp.int32, (NP, MP), 0)         # node id on sublanes
    lane_iota = lax.broadcasted_iota(jnp.int32, (MP, NP), 1)        # node id on lanes
    Rv = jnp.where(rows_row_ref[...] == sub_iota, vals_row, 0.0).astype(bf16)   # (NP, MP)
    Cv = jnp.where(cols_row_ref[...] == sub_iota, vals_row, 0.0).astype(bf16)   # (NP, MP)
    # edge-major one-hots:  Ren[k, j] = [rows_k == j]
    Ren = jnp.where(rows_col_ref[...] == lane_iota, 1.0, 0.0).astype(bf16)      # (MP, NP)
    Cen = jnp.where(cols_col_ref[...] == lane_iota, 1.0, 0.0).astype(bf16)      # (MP, NP)
    # A[i,j] = sum_k v_k [r_k==i][c_k==j] + sum_k v_k [c_k==i][r_k==j]
    # (edges are strictly upper-triangular, so this equals A + A.T - diag(diag(A)))
    A = (jnp.dot(Rv, Cen, preferred_element_type=f32)
         + jnp.dot(Cv, Ren, preferred_element_type=f32))            # (NP, NP) f32, {0,1}
    A_bf = A.astype(bf16)                                           # exact for {0,1}

    # ---- N, E (A symmetric, zero in padded rows/cols) ----
    N = jnp.sum(A, axis=0, keepdims=True)                           # (1, NP)
    B = jnp.dot(A_bf, A_bf, preferred_element_type=f32)             # A^2, exact small ints
    diag3 = jnp.sum(B * A, axis=0, keepdims=True)                   # diag(A^3) as (1, NP)
    E = N + 0.5 * diag3

    # ---- masks built in-kernel (no XLA scatters / pads) ----
    node_iota = lax.broadcasted_iota(jnp.int32, (1, NP), 1)
    vmask = jnp.where(node_iota < n_node, 1.0, 0.0)                 # real nodes
    tgt_iota = lax.broadcasted_iota(jnp.int32, (TP, NP), 1)
    tmask = jnp.sum(jnp.where(tgt_ref[...] == tgt_iota, 1.0, 0.0),
                    axis=0, keepdims=True)                          # (1, NP) multiplicity

    logN = jnp.log(N + 1e-20)
    logE = jnp.log(E + 1e-20)

    # ---- OLS normal equations: theta = inv(X^T X) X^T y, X=[1, logN], y=logE ----
    s0 = float(n_node)                       # sum(vmask) is known statically
    wlogN = vmask * logN
    s1 = jnp.sum(wlogN)
    s2 = jnp.sum(wlogN * logN)
    t0 = jnp.sum(vmask * logE)
    t1 = jnp.sum(wlogN * logE)
    det = s0 * s2 - s1 * s1
    b = (s2 * t0 - s1 * t1) / det
    w = (s0 * t1 - s1 * t0) / det

    # ---- loss = sum_{i in target_lst} (exp(b) * N_i**w - E_i)**2  (single exp) ----
    logN_t = jnp.where(tmask > 0, logN, 0.0)     # reuse logN; exact for N >= 1
    pred = jnp.exp(b + w * logN_t)
    resid = jnp.where(tmask > 0, pred - E, 0.0)
    out_ref[0, 0] = jnp.sum(tmask * resid * resid)


@functools.partial(jax.jit, static_argnames=("n_node",))
def multiple_as_forward(tri, par, atk_link_idx, target_lst, n_node):
    """tri: (m, 3) float32 rows [i, j, value] over all upper-triangular pairs."""
    m = tri.shape[0]
    nt = target_lst.shape[0]
    assert n_node <= NP and m <= MP and nt <= TP

    # perturb (plain jnp; tiny elementwise, fused by XLA with the `par` scatter)
    z_cont = jnp.full((m,), 0.49, jnp.float32)
    z_cont = z_cont.at[jnp.asarray(atk_link_idx)].set(par[:, 0])
    Z = -2.0 * jnp.round(z_cont) + 1.0
    vals_new = (tri[:, 2].astype(jnp.float32) - 0.5) * Z + 0.5      # stays in {0,1}

    rows = tri[:, 0].astype(jnp.int32)
    cols = tri[:, 1].astype(jnp.int32)
    t = jnp.asarray(target_lst, jnp.int32)

    # pad per-edge vectors into lane-major / sublane-major layouts (-1 = unused slot)
    vals_row = jnp.zeros((1, MP), jnp.float32).at[0, :m].set(vals_new)
    rows_row = jnp.full((1, MP), -1, jnp.int32).at[0, :m].set(rows)
    cols_row = jnp.full((1, MP), -1, jnp.int32).at[0, :m].set(cols)
    rows_col = jnp.full((MP, 1), -1, jnp.int32).at[:m, 0].set(rows)
    cols_col = jnp.full((MP, 1), -1, jnp.int32).at[:m, 0].set(cols)
    tgt_col = jnp.full((TP, 1), -1, jnp.int32).at[:nt, 0].set(t)

    loss = pl.pallas_call(
        functools.partial(fused_loss_kernel, int(n_node)),
        out_shape=jax.ShapeDtypeStruct((1, 1), jnp.float32),
        in_specs=[pl.BlockSpec(memory_space=pltpu.MemorySpace.VMEM)] * 6,
        out_specs=pl.BlockSpec(memory_space=pltpu.MemorySpace.SMEM),
    )(vals_row, rows_row, cols_row, rows_col, cols_col, tgt_col)
    return loss.reshape(1)  # matches torch output shape (1,)


def reference_forward(tri, par, atk_link_idx, target_lst, n_node):
    """Plain-JAX replica of the PyTorch forward (for correctness check)."""
    m = tri.shape[0]
    z_cont = 0.49 * jnp.ones((m, 1), jnp.float32)
    z_cont = z_cont.at[atk_link_idx].set(par)
    Z = -2.0 * jnp.round(z_cont) + 1.0
    vals = ((tri[:, 2:] - 0.5) * Z + 0.5)[:, 0]
    rows = tri[:, 0].astype(jnp.int32)
    cols = tri[:, 1].astype(jnp.int32)
    A = jnp.zeros((n_node, n_node), jnp.float32).at[rows, cols].add(vals)
    A = A + A.T - jnp.diag(jnp.diag(A))
    N = A.sum(1)
    E = N + 0.5 * jnp.diag(A @ A @ A)
    logN = jnp.log(N + 1e-20)
    logE = jnp.log(E + 1e-20)
    X = jnp.stack([jnp.ones(n_node), logN], axis=1)
    theta = jnp.linalg.inv(X.T @ X) @ X.T @ logE
    b, w = theta[0], theta[1]
    t = jnp.asarray(target_lst)
    return jnp.sum((jnp.exp(b) * N[t] ** w - E[t]) ** 2)


if __name__ == "__main__":
    n_node = 16
    rows, cols = jnp.triu_indices(n_node, 1)
    m = int(rows.shape[0])  # 0.5 * n * (n - 1) = 120

    key = jax.random.PRNGKey(0)
    edge_vals = jax.random.bernoulli(key, 0.35, (m,)).astype(jnp.float32)
    # force a ring so every node has degree >= 2 (keeps N, E strictly positive)
    ring = ((cols - rows) == 1) | ((rows == 0) & (cols == n_node - 1))
    edge_vals = jnp.where(ring, 1.0, edge_vals)
    tri = jnp.stack(
        [rows.astype(jnp.float32), cols.astype(jnp.float32), edge_vals], axis=1
    )  # (120, 3)

    atk_link_idx = jnp.array([1, 7, 23, 42, 77], dtype=jnp.int32)
    # nn.Parameter init: 0.49 * ones((0.5*n*(n-1), 1))[atk_link_idx]
    par = 0.49 * jnp.ones((atk_link_idx.shape[0], 1), jnp.float32)
    target_lst = jnp.array([0, 3, 5, 11], dtype=jnp.int32)

    out = jax.block_until_ready(
        multiple_as_forward(tri, par, atk_link_idx, target_lst, n_node=n_node)
    )
    ref = reference_forward(tri, par, atk_link_idx, target_lst, n_node)
    assert out.shape == (1,)
    assert bool(jnp.isfinite(out[0]))
    assert bool(jnp.allclose(out[0], ref, rtol=1e-3, atol=1e-3)), (out, ref)
    print("KERNEL_OK")
</pallas_src>

<mosaic_0001>
module attributes {stable_mosaic.version = 11 : i64} {
  func.func @fused_loss_kernel(%arg0: memref<1x128xf32, #tpu.memory_space<vmem>>, %arg1: memref<1x128xi32, #tpu.memory_space<vmem>>, %arg2: memref<1x128xi32, #tpu.memory_space<vmem>>, %arg3: memref<128x1xi32, #tpu.memory_space<vmem>>, %arg4: memref<128x1xi32, #tpu.memory_space<vmem>>, %arg5: memref<8x1xi32, #tpu.memory_space<vmem>>, %arg6: memref<1x1xf32, #tpu.memory_space<smem>>) attributes {dimension_semantics = [], scalar_prefetch = 0 : i64, scratch_operands = 0 : i64, tpu.core_type = #tpu.core_type<tc>} {
    %c0 = arith.constant 0 : index
    %c0_0 = arith.constant 0 : index
    %0 = vector.load %arg0[%c0, %c0_0] : memref<1x128xf32, #tpu.memory_space<vmem>>, vector<1x128xf32>
    %1 = tpu.iota {dimensions = array<i32: 0>} : vector<128x128xi32>
    %2 = tpu.iota {dimensions = array<i32: 1>} : vector<128x128xi32>
    %c0_1 = arith.constant 0 : index
    %c0_2 = arith.constant 0 : index
    %3 = vector.load %arg1[%c0_1, %c0_2] : memref<1x128xi32, #tpu.memory_space<vmem>>, vector<1x128xi32>
    %4 = vector.broadcast %3 : vector<1x128xi32> to vector<128x128xi32>
    %5 = arith.cmpi eq, %4, %1 : vector<128x128xi32>
    %cst = arith.constant 0.000000e+00 : f32
    %6 = vector.shape_cast %0 : vector<1x128xf32> to vector<1x128xf32>
    %7 = vector.broadcast %6 : vector<1x128xf32> to vector<128x128xf32>
    %8 = vector.broadcast %cst : f32 to vector<128x128xf32>
    %9 = arith.select %5, %7, %8 : vector<128x128xi1>, vector<128x128xf32>
    %10 = arith.truncf %9 : vector<128x128xf32> to vector<128x128xbf16>
    %c0_3 = arith.constant 0 : index
    %c0_4 = arith.constant 0 : index
    %11 = vector.load %arg2[%c0_3, %c0_4] : memref<1x128xi32, #tpu.memory_space<vmem>>, vector<1x128xi32>
    %12 = vector.broadcast %11 : vector<1x128xi32> to vector<128x128xi32>
    %13 = arith.cmpi eq, %12, %1 : vector<128x128xi32>
    %cst_5 = arith.constant 0.000000e+00 : f32
    %14 = vector.shape_cast %0 : vector<1x128xf32> to vector<1x128xf32>
    %15 = vector.broadcast %14 : vector<1x128xf32> to vector<128x128xf32>
    %16 = vector.broadcast %cst_5 : f32 to vector<128x128xf32>
    %17 = arith.select %13, %15, %16 : vector<128x128xi1>, vector<128x128xf32>
    %18 = arith.truncf %17 : vector<128x128xf32> to vector<128x128xbf16>
    %c0_6 = arith.constant 0 : index
    %c0_7 = arith.constant 0 : index
    %19 = vector.load %arg3[%c0_6, %c0_7] : memref<128x1xi32, #tpu.memory_space<vmem>>, vector<128x1xi32>
    %20 = vector.broadcast %19 : vector<128x1xi32> to vector<128x128xi32>
    %21 = arith.cmpi eq, %20, %2 : vector<128x128xi32>
    %cst_8 = arith.constant 1.000000e+00 : f32
    %cst_9 = arith.constant 0.000000e+00 : f32
    %22 = vector.broadcast %cst_8 : f32 to vector<128x128xf32>
    %23 = vector.broadcast %cst_9 : f32 to vector<128x128xf32>
    %24 = arith.select %21, %22, %23 : vector<128x128xi1>, vector<128x128xf32>
    %25 = arith.truncf %24 : vector<128x128xf32> to vector<128x128xbf16>
    %c0_10 = arith.constant 0 : index
    %c0_11 = arith.constant 0 : index
    %26 = vector.load %arg4[%c0_10, %c0_11] : memref<128x1xi32, #tpu.memory_space<vmem>>, vector<128x1xi32>
    %27 = vector.broadcast %26 : vector<128x1xi32> to vector<128x128xi32>
    %28 = arith.cmpi eq, %27, %2 : vector<128x128xi32>
    %cst_12 = arith.constant 1.000000e+00 : f32
    %cst_13 = arith.constant 0.000000e+00 : f32
    %29 = vector.broadcast %cst_12 : f32 to vector<128x128xf32>
    %30 = vector.broadcast %cst_13 : f32 to vector<128x128xf32>
    %31 = arith.select %28, %29, %30 : vector<128x128xi1>, vector<128x128xf32>
    %32 = arith.truncf %31 : vector<128x128xf32> to vector<128x128xbf16>
    %cst_14 = arith.constant dense<0.000000e+00> : vector<128x128xf32>
    %33 = tpu.matmul %10, %32, %cst_14 {dimension_numbers = #tpu.dot_dimension_numbers<[1], [0], [0], [1], [0, 0, 1, 1], [], []>} : vector<128x128xbf16>, vector<128x128xbf16>, vector<128x128xf32> -> vector<128x128xf32>
    %cst_15 = arith.constant dense<0.000000e+00> : vector<128x128xf32>
    %34 = tpu.matmul %18, %25, %cst_15 {dimension_numbers = #tpu.dot_dimension_numbers<[1], [0], [0], [1], [0, 0, 1, 1], [], []>} : vector<128x128xbf16>, vector<128x128xbf16>, vector<128x128xf32> -> vector<128x128xf32>
    %35 = arith.addf %33, %34 : vector<128x128xf32>
    %36 = arith.truncf %35 : vector<128x128xf32> to vector<128x128xbf16>
    %cst_16 = arith.constant dense<0.000000e+00> : vector<128xf32>
    %37 = vector.multi_reduction <add>, %35, %cst_16 [0] : vector<128x128xf32> to vector<128xf32>
    %38 = vector.shape_cast %37 : vector<128xf32> to vector<1x128xf32>
    %cst_17 = arith.constant dense<0.000000e+00> : vector<128x128xf32>
    %39 = tpu.matmul %36, %36, %cst_17 {dimension_numbers = #tpu.dot_dimension_numbers<[1], [0], [0], [1], [0, 0, 1, 1], [], []>} : vector<128x128xbf16>, vector<128x128xbf16>, vector<128x128xf32> -> vector<128x128xf32>
    %40 = arith.mulf %39, %35 : vector<128x128xf32>
    %cst_18 = arith.constant dense<0.000000e+00> : vector<128xf32>
    %41 = vector.multi_reduction <add>, %40, %cst_18 [0] : vector<128x128xf32> to vector<128xf32>
    %42 = vector.shape_cast %41 : vector<128xf32> to vector<1x128xf32>
    %cst_19 = arith.constant 5.000000e-01 : f32
    %43 = vector.broadcast %cst_19 : f32 to vector<1x128xf32>
    %44 = arith.mulf %43, %42 : vector<1x128xf32>
    %45 = arith.addf %38, %44 : vector<1x128xf32>
    %46 = tpu.iota {dimensions = array<i32: 1>} : vector<1x128xi32>
    %c16_i32 = arith.constant 16 : i32
    %47 = vector.broadcast %c16_i32 : i32 to vector<1x128xi32>
    %48 = arith.cmpi slt, %46, %47 : vector<1x128xi32>
    %cst_20 = arith.constant 1.000000e+00 : f32
    %cst_21 = arith.constant 0.000000e+00 : f32
    %49 = vector.broadcast %cst_20 : f32 to vector<1x128xf32>
    %50 = vector.broadcast %cst_21 : f32 to vector<1x128xf32>
    %51 = arith.select %48, %49, %50 : vector<1x128xi1>, vector<1x128xf32>
    %52 = tpu.iota {dimensions = array<i32: 1>} : vector<8x128xi32>
    %c0_22 = arith.constant 0 : index
    %c0_23 = arith.constant 0 : index
    %53 = vector.load %arg5[%c0_22, %c0_23] : memref<8x1xi32, #tpu.memory_space<vmem>>, vector<8x1xi32>
    %54 = vector.broadcast %53 : vector<8x1xi32> to vector<8x128xi32>
    %55 = arith.cmpi eq, %54, %52 : vector<8x128xi32>
    %cst_24 = arith.constant 1.000000e+00 : f32
    %cst_25 = arith.constant 0.000000e+00 : f32
    %56 = vector.broadcast %cst_24 : f32 to vector<8x128xf32>
    %57 = vector.broadcast %cst_25 : f32 to vector<8x128xf32>
    %58 = arith.select %55, %56, %57 : vector<8x128xi1>, vector<8x128xf32>
    %cst_26 = arith.constant dense<0.000000e+00> : vector<128xf32>
    %59 = vector.multi_reduction <add>, %58, %cst_26 [0] : vector<8x128xf32> to vector<128xf32>
    %60 = vector.shape_cast %59 : vector<128xf32> to vector<1x128xf32>
    %cst_27 = arith.constant 9.99999968E-21 : f32
    %61 = vector.broadcast %cst_27 : f32 to vector<1x128xf32>
    %62 = arith.addf %38, %61 : vector<1x128xf32>
    %63 = math.log %62 : vector<1x128xf32>
    %cst_28 = arith.constant 9.99999968E-21 : f32
    %64 = vector.broadcast %cst_28 : f32 to vector<1x128xf32>
    %65 = arith.addf %45, %64 : vector<1x128xf32>
    %66 = math.log %65 : vector<1x128xf32>
    %67 = arith.mulf %51, %63 : vector<1x128xf32>
    %68 = vector.shape_cast %67 : vector<1x128xf32> to vector<1x1x128xf32>
    %cst_29 = arith.constant dense<0.000000e+00> : vector<1xf32>
    %69 = vector.multi_reduction <add>, %68, %cst_29 [1, 2] : vector<1x1x128xf32> to vector<1xf32>
    %70 = vector.shape_cast %69 : vector<1xf32> to vector<1x1x1xf32>
    %71 = vector.extract %70[0, 0, 0] : f32 from vector<1x1x1xf32>
    %72 = arith.mulf %67, %63 : vector<1x128xf32>
    %73 = vector.shape_cast %72 : vector<1x128xf32> to vector<1x1x128xf32>
    %cst_30 = arith.constant dense<0.000000e+00> : vector<1xf32>
    %74 = vector.multi_reduction <add>, %73, %cst_30 [1, 2] : vector<1x1x128xf32> to vector<1xf32>
    %75 = vector.shape_cast %74 : vector<1xf32> to vector<1x1x1xf32>
    %76 = vector.extract %75[0, 0, 0] : f32 from vector<1x1x1xf32>
    %77 = arith.mulf %51, %66 : vector<1x128xf32>
    %78 = vector.shape_cast %77 : vector<1x128xf32> to vector<1x1x128xf32>
    %cst_31 = arith.constant dense<0.000000e+00> : vector<1xf32>
    %79 = vector.multi_reduction <add>, %78, %cst_31 [1, 2] : vector<1x1x128xf32> to vector<1xf32>
    %80 = vector.shape_cast %79 : vector<1xf32> to vector<1x1x1xf32>
    %81 = vector.extract %80[0, 0, 0] : f32 from vector<1x1x1xf32>
    %82 = arith.mulf %67, %66 : vector<1x128xf32>
    %83 = vector.shape_cast %82 : vector<1x128xf32> to vector<1x1x128xf32>
    %cst_32 = arith.constant dense<0.000000e+00> : vector<1xf32>
    %84 = vector.multi_reduction <add>, %83, %cst_32 [1, 2] : vector<1x1x128xf32> to vector<1xf32>
    %85 = vector.shape_cast %84 : vector<1xf32> to vector<1x1x1xf32>
    %86 = vector.extract %85[0, 0, 0] : f32 from vector<1x1x1xf32>
    %cst_33 = arith.constant 1.600000e+01 : f32
    %87 = arith.mulf %cst_33, %76 : f32
    %88 = arith.mulf %71, %71 : f32
    %89 = arith.subf %87, %88 : f32
    %90 = arith.mulf %76, %81 : f32
    %91 = arith.mulf %71, %86 : f32
    %92 = arith.subf %90, %91 : f32
    %93 = arith.divf %92, %89 : f32
    %cst_34 = arith.constant 1.600000e+01 : f32
    %94 = arith.mulf %cst_34, %86 : f32
    %95 = arith.mulf %71, %81 : f32
    %96 = arith.subf %94, %95 : f32
    %97 = arith.divf %96, %89 : f32
    %cst_35 = arith.constant 0.000000e+00 : f32
    %98 = vector.broadcast %cst_35 : f32 to vector<1x128xf32>
    %99 = arith.cmpf ogt, %60, %98 : vector<1x128xf32>
    %cst_36 = arith.constant 0.000000e+00 : f32
    %100 = vector.broadcast %cst_36 : f32 to vector<1x128xf32>
    %101 = arith.select %99, %63, %100 : vector<1x128xi1>, vector<1x128xf32>
    %102 = vector.broadcast %97 : f32 to vector<1x128xf32>
    %103 = arith.mulf %102, %101 : vector<1x128xf32>
    %104 = vector.broadcast %93 : f32 to vector<1x128xf32>
    %105 = arith.addf %104, %103 : vector<1x128xf32>
    %106 = math.exp %105 : vector<1x128xf32>
    %cst_37 = arith.constant 0.000000e+00 : f32
    %107 = vector.broadcast %cst_37 : f32 to vector<1x128xf32>
    %108 = arith.cmpf ogt, %60, %107 : vector<1x128xf32>
    %109 = arith.subf %106, %45 : vector<1x128xf32>
    %cst_38 = arith.constant 0.000000e+00 : f32
    %110 = vector.broadcast %cst_38 : f32 to vector<1x128xf32>
    %111 = arith.select %108, %109, %110 : vector<1x128xi1>, vector<1x128xf32>
    %112 = arith.mulf %60, %111 : vector<1x128xf32>
    %113 = arith.mulf %112, %111 : vector<1x128xf32>
    %114 = vector.shape_cast %113 : vector<1x128xf32> to vector<1x1x128xf32>
    %cst_39 = arith.constant dense<0.000000e+00> : vector<1xf32>
    %115 = vector.multi_reduction <add>, %114, %cst_39 [1, 2] : vector<1x1x128xf32> to vector<1xf32>
    %116 = vector.shape_cast %115 : vector<1xf32> to vector<1x1x1xf32>
    %117 = vector.extract %116[0, 0, 0] : f32 from vector<1x1x1xf32>
    %c0_40 = arith.constant 0 : index
    %c0_41 = arith.constant 0 : index
    %118 = memref.load %arg6[%c0_40, %c0_41] : memref<1x1xf32, #tpu.memory_space<smem>>
    memref.store %117, %arg6[%c0_40, %c0_41] : memref<1x1xf32, #tpu.memory_space<smem>>
    return
  }
}

</mosaic_0001>

<bundles_post_ra>
// kernel: multiple_as_forward.1
= control target key start
LH: loop header
LB: loop body
LE: loop exit
PB: predicated region body
PF: predicated region fallthrough
CT: control target
= control target key end

     0   :  { %v849_v3 = vmov 0   ;;  %s1338_s0 = inlined_call_operand.vmem [shape: f32[1,128], index: 0, kind: input, shape index: {}]   ;;  %s1339_s1 = inlined_call_operand.vmem [shape: s32[1,128], index: 1, kind: input, shape index: {}]   ;;  %s1340_s2 = inlined_call_operand.vmem [shape: s32[1,128], index: 2, kind: input, shape index: {}]   ;;  %s1341_s3 = inlined_call_operand.vmem [shape: s32[128,1], index: 3, kind: input, shape index: {}]   ;;  %s1342_s4 = inlined_call_operand.vmem [shape: s32[128,1], index: 4, kind: input, shape index: {}]   ;;  %s1343_s5 = inlined_call_operand.vmem [shape: s32[8,1], index: 5, kind: input, shape index: {}]   ;;  %s1344_s6 = inlined_call_operand.hbm [shape: f32[1,1], index: 6, kind: output, shape index: {}]  }
   0x1   :  { %v249_v0 = vld [vmem:[%s1342_s4 + $0x70] sm:$0xff]  ;;  %v143_v2 = vld [vmem:[%s1341_s3 + $0x60] sm:$0xff]  ;;  %823 = vset.pattern.permute.xlu2 %v849_v3  ;;  %822 = vset.pattern.permute.xlu1 %v849_v3 }
   0x2   :  { %v145_v1 = vld [vmem:[%s1341_s3 + $0x70] sm:$0xff]  ;;  %821 = vset.pattern.permute.xlu0 %v849_v3  ;;  %294 = vperm.xlu1 %822, %v249_v0  }
   0x3   :  { %190 = vperm.xlu0 %821, %v145_v1   ;;  %184 = vperm.xlu2 %823, %v143_v2  }
   0x4   :  { %11 = vsyncpa [#allocation3], 0  ;;  %v250_v4 = vld [vmem:[%s1342_s4 + $0x78] sm:$0xff]  ;;  %v144_v6 = vld [vmem:[%s1341_s3 + $0x68] sm:$0xff]  ;;  %v25_v37 = vlaneseq  ;;  %v850_v44 = vmov 1.0|1.0  }
   0x5   :  { %v146_v5 = vld [vmem:[%s1341_s3 + $0x78] sm:$0xff]  ;;  %v248_v7 = vld [vmem:[%s1342_s4 + $0x68] sm:$0xff]  ;;  %v247_v8 = vld [vmem:[%s1342_s4 + $0x60] sm:$0xff]  ;;  %v1355_v62 = vmov 0  ;;  %v1357_v1 = vmov 0  ;;  %s691_s9 = sshll.u32 %s1344_s6, 4  ;;  %s692_s9 = int_to_ptr.hbm [resolvable:$true] %s691_s9 }
   0x6   :  { %v141_v9 = vld [vmem:[%s1341_s3 + $0x50] sm:$0xff]  ;;  %v142_v11 = vld [vmem:[%s1341_s3 + $0x58] sm:$0xff]  ;;  %v140_v13 = vld [vmem:[%s1341_s3 + $0x48] sm:$0xff]  ;;  %v985_v39 = vand.u32 127, %v25_v37  ;;  %v1066_v3 = vshrl.u32 %v25_v37, 7  ;;  %s852_s11 = smov [#allocation2]  }
   0x7   :  { %v245_v10 = vld [vmem:[%s1342_s4 + $0x50] sm:$0xff]  ;;  %v246_v12 = vld [vmem:[%s1342_s4 + $0x58] sm:$0xff]  ;;  %v243_v14 = vld [vmem:[%s1342_s4 + $0x40] sm:$0xff] }
   0x8   :  { %v139_v15 = vld [vmem:[%s1341_s3 + $0x40] sm:$0xff]  ;;  %v137_v16 = vld [vmem:[%s1341_s3 + $0x30] sm:$0xff]  ;;  %v244_v17 = vld [vmem:[%s1342_s4 + $0x48] sm:$0xff] }
   0x9   :  { %v138_v18 = vld [vmem:[%s1341_s3 + $0x38] sm:$0xff]  ;;  %v241_v20 = vld [vmem:[%s1342_s4 + $0x30] sm:$0xff]  ;;  %v135_v21 = vld [vmem:[%s1341_s3 + $0x20] sm:$0xff] }
   0xa   :  { %297 = vperm.xlu1 %822, %v250_v4   ;;  %v242_v19 = vld [vmem:[%s1342_s4 + $0x38] sm:$0xff]  ;;  %v239_v22 = vld [vmem:[%s1342_s4 + $0x20] sm:$0xff]  ;;  %v136_v23 = vld [vmem:[%s1341_s3 + $0x28] sm:$0xff] }
   0xb   :  { %193 = vperm.xlu0 %821, %v146_v5   ;;  %187 = vperm.xlu2 %823, %v144_v6   ;;  %v240_v24 = vld [vmem:[%s1342_s4 + $0x28] sm:$0xff]  ;;  %v134_v25 = vld [vmem:[%s1341_s3 + $0x18] sm:$0xff]  ;;  %v237_v26 = vld [vmem:[%s1342_s4 + $0x10] sm:$0xff]  ;;  %v27_v6 = vadd.s32 8, %v1066_v3 }
   0xc   :  { %v133_v27 = vld [vmem:[%s1341_s3 + $0x10] sm:$0xff]  ;;  %v131_v28 = vld [vmem:[%s1341_s3] sm:$0xff]  ;;  %v238_v29 = vld [vmem:[%s1342_s4 + $0x18] sm:$0xff] }
   0xd   :  { %v132_v30 = vld [vmem:[%s1341_s3 + $0x8] sm:$0xff]  ;;  %v235_v32 = vld [vmem:[%s1342_s4] sm:$0xff] }
   0xe   :  { %v236_v31 = vld [vmem:[%s1342_s4 + $0x8] sm:$0xff] }
  0x12   :  { %291 = vperm.xlu1 %822, %v248_v7   ;;  %v1073_v7 = vld [vmem:[%s1340_s2] ss:$0 sm:$0xff] }
  0x13   :  { %288 = vperm.xlu0 %821, %v247_v8   ;;  %178 = vperm.xlu2 %823, %v141_v9   ;;  %v1077_v8 = vadd.s32 96, %v1066_v3  ;;  %v1080_v9 = vadd.s32 104, %v1066_v3 }
  0x1a   :  { %282 = vperm.xlu1 %822, %v245_v10  }
  0x1b   :  { %181 = vperm.xlu0 %821, %v142_v11   ;;  %285 = vperm.xlu2 %823, %v246_v12   ;;  %v824_v11 = vld [vmem:[%s1338_s0] ss:$0 sm:$0xff] }
  0x22   :  { %175 = vperm.xlu1 %822, %v140_v13  }
  0x23   :  { %276 = vperm.xlu2 %823, %v243_v14   ;;  %172 = vperm.xlu0 %821, %v139_v15   ;;  %v1098_v14 = vpack.c.bf16 %v824_v11, %v824_v11 }
  0x2a   :  { %166 = vperm.xlu1 %822, %v137_v16   ;;  %v1115_v16 = vld [vmem:[%s1339_s1] ss:$0 sm:$0xff] }
  0x2b   :  { %279 = vperm.xlu0 %821, %v244_v17   ;;  %169 = vperm.xlu2 %823, %v138_v18  }
  0x32   :  { %273 = vperm.xlu1 %822, %v242_v19  }
  0x33   :  { %270 = vperm.xlu0 %821, %v241_v20   ;;  %160 = vperm.xlu2 %823, %v135_v21   ;;  %v28_v20 = vadd.s32 16, %v1066_v3  ;;  %v29_v21 = vadd.s32 24, %v1066_v3 }
  0x3a   :  { %264 = vperm.xlu1 %822, %v239_v22   ;;  %v40_v22 = vadd.s32 112, %v1066_v3 }
  0x3b   :  { %163 = vperm.xlu0 %821, %v136_v23   ;;  %267 = vperm.xlu2 %823, %v240_v24   ;;  %v41_v23 = vadd.s32 120, %v1066_v3  ;;  %v30_v24 = vadd.s32 32, %v1066_v3 }
  0x42   :  { %157 = vperm.xlu1 %822, %v134_v25   ;;  %v31_v25 = vadd.s32 40, %v1066_v3 }
  0x43   :  { %258 = vperm.xlu2 %823, %v237_v26   ;;  %154 = vperm.xlu0 %821, %v133_v27   ;;  %v32_v26 = vadd.s32 48, %v1066_v3  ;;  %v33_v27 = vadd.s32 56, %v1066_v3 }
  0x4a   :  { %148 = vperm.xlu1 %822, %v131_v28   ;;  %v34_v28 = vadd.s32 64, %v1066_v3 }
  0x4b   :  { %261 = vperm.xlu0 %821, %v238_v29   ;;  %151 = vperm.xlu2 %823, %v132_v30   ;;  %v35_v29 = vadd.s32 72, %v1066_v3  ;;  %v36_v30 = vadd.s32 80, %v1066_v3 }
  0x52   :  { %255 = vperm.xlu1 %822, %v236_v31   ;;  %v37_v31 = vadd.s32 88, %v1066_v3 }
  0x53   :  { %252 = vperm.xlu0 %821, %v235_v32  }
  0x5d   :  { %v185_v33 = vpop.permute.xlu2 %184 }
  0x5e   :  { %vm207_vm6 = vcmp.eq.s32.totalorder %v185_v33, %v985_v39 }
  0x65   :  { %v188_v34 = vpop.permute.xlu2 %187 }
  0x66   :  { %vm208_vm7 = vcmp.eq.s32.totalorder %v188_v34, %v985_v39 }
  0x67   :  { %vm703_vm8 = vmpackc.low %vm208_vm7, %vm207_vm6 }
  0x6d   :  { %v179_v35 = vpop.permute.xlu2 %178 }
  0x6e   :  { %vm205_vm14 = vcmp.eq.s32.totalorder %v179_v35, %v985_v39 }
  0x74   :  { %v295_v36 = vpop.permute.xlu1 %294 }
  0x75   :  { %v191_v38 = vpop.permute.xlu0 %190  ;;  %vm313_vm0 = vcmp.eq.s32.totalorder %v295_v36, %v985_v39  ;;  %v286_v42 = vpop.permute.xlu2 %285 }
  0x76   :  { %vm209_vm2 = vcmp.eq.s32.totalorder %v191_v38, %v985_v39  ;;  %vm310_vm12 = vcmp.eq.s32.totalorder %v286_v42, %v985_v39 }
  0x7c   :  { %v298_v40 = vpop.permute.xlu1 %297 }
  0x7d   :  { %vm314_vm1 = vcmp.eq.s32.totalorder %v298_v40, %v985_v39  ;;  %v194_v41 = vpop.permute.xlu0 %193  ;;  %v277_v48 = vpop.permute.xlu2 %276 }
  0x7e   :  { %vm210_vm3 = vcmp.eq.s32.totalorder %v194_v41, %v985_v39  ;;  %vm991_vm4 = vmpackc.low %vm314_vm1, %vm313_vm0 }
  0x7f   :  { %vm701_vm5 = vmpackc.low %vm210_vm3, %vm209_vm2  ;;  %742 = vmatpush.bf16.msk.msra.mxu1 %vm991_vm4, %v850_v44 }
  0x80   :  { %702 = vmatpush.bf16.msk.msra.mxu0 %vm701_vm5, %v850_v44  ;;  %781 = vmatpush.bf16.msk.msra.mxu3 %vm701_vm5, %v850_v44 }
  0x84   :  { %704 = vmatpush.bf16.msk.msra.mxu0 %vm703_vm8, %v850_v44  ;;  %782 = vmatpush.bf16.msk.msra.mxu3 %vm703_vm8, %v850_v44  ;;  %v292_v45 = vpop.permute.xlu1 %291  ;;  %vm307_vm8 = vcmp.eq.s32.totalorder %v277_v48, %v985_v39 }
  0x85   :  { %vm312_vm9 = vcmp.eq.s32.totalorder %v292_v45, %v985_v39  ;;  %v289_v46 = vpop.permute.xlu0 %288  ;;  %v170_v52 = vpop.permute.xlu2 %169 }
  0x86   :  { %vm311_vm10 = vcmp.eq.s32.totalorder %v289_v46, %v985_v39  ;;  %vm202_vm6 = vcmp.eq.s32.totalorder %v170_v52, %v985_v39 }
  0x87   :  { %vm1006_vm11 = vmpackc.low %vm312_vm9, %vm311_vm10 }
  0x88   :  { %744 = vmatpush.bf16.msk.msra.mxu1 %vm1006_vm11, %v850_v44 }
  0x8c   :  { %v283_v49 = vpop.permute.xlu1 %282 }
  0x8d   :  { %vm309_vm13 = vcmp.eq.s32.totalorder %v283_v49, %v985_v39  ;;  %v182_v50 = vpop.permute.xlu0 %181  ;;  %v161_v55 = vpop.permute.xlu2 %160 }
  0x8e   :  { %vm1016_vm15 = vmpackc.low %vm310_vm12, %vm309_vm13  ;;  %vm206_vm0 = vcmp.eq.s32.totalorder %v182_v50, %v985_v39 }
  0x8f   :  { %vm705_vm1 = vmpackc.low %vm206_vm0, %vm205_vm14  ;;  %746 = vmatpush.bf16.msk.msra.mxu1 %vm1016_vm15, %v850_v44 }
  0x90   :  { %706 = vmatpush.bf16.msk.msra.mxu0 %vm705_vm1, %v850_v44  ;;  %783 = vmatpush.bf16.msk.msra.mxu3 %vm705_vm1, %v850_v44 }
  0x94   :  { %v176_v53 = vpop.permute.xlu1 %175 }
  0x95   :  { %vm204_vm2 = vcmp.eq.s32.totalorder %v176_v53, %v985_v39  ;;  %v173_v54 = vpop.permute.xlu0 %172  ;;  %v268_v61 = vpop.permute.xlu2 %267 }
  0x96   :  { %vm203_vm3 = vcmp.eq.s32.totalorder %v173_v54, %v985_v39  ;;  %vm304_vm1 = vcmp.eq.s32.totalorder %v268_v61, %v985_v39 }
  0x97   :  { %vm707_vm5 = vmpackc.low %vm204_vm2, %vm203_vm3  ;;  %vm199_vm3 = vcmp.eq.s32.totalorder %v161_v55, %v985_v39 }
  0x98   :  { %708 = vmatpush.bf16.msk.msra.mxu0 %vm707_vm5, %v850_v44  ;;  %784 = vmatpush.bf16.msk.msra.mxu3 %vm707_vm5, %v850_v44 }
  0x9c   :  { %v167_v56 = vpop.permute.xlu1 %166 }
  0x9d   :  { %v280_v57 = vpop.permute.xlu0 %279  ;;  %vm201_vm7 = vcmp.eq.s32.totalorder %v167_v56, %v985_v39  ;;  %v259_v2 = vpop.permute.xlu2 %258 }
  0x9e   :  { %vm308_vm9 = vcmp.eq.s32.totalorder %v280_v57, %v985_v39  ;;  %vm709_vm10 = vmpackc.low %vm202_vm6, %vm201_vm7 }
  0x9f   :  { %vm1034_vm12 = vmpackc.low %vm308_vm9, %vm307_vm8  ;;  %710 = vmatpush.bf16.msk.msra.mxu0 %vm709_vm10, %v850_v44  ;;  %785 = vmatpush.bf16.msk.msra.mxu3 %vm709_vm10, %v850_v44 }
  0xa0   :  { %748 = vmatpush.bf16.msk.msra.mxu1 %vm1034_vm12, %v850_v44 }
  0xa4   :  { %v274_v59 = vpop.permute.xlu1 %273 }
  0xa5   :  { %v271_v60 = vpop.permute.xlu0 %270  ;;  %vm306_vm13 = vcmp.eq.s32.totalorder %v274_v59, %v985_v39  ;;  %v152_v10 = vpop.permute.xlu2 %151 }
  0xa6   :  { %vm305_vm14 = vcmp.eq.s32.totalorder %v271_v60, %v985_v39 }
  0xa7   :  { %vm1045_vm0 = vmpackc.low %vm306_vm13, %vm305_vm14  ;;  %vm91_vm13 = vcmp.eq.s32.totalorder %v1073_v7, %v1066_v3  ;;  %vm92_vm14 = vcmp.eq.s32.totalorder %v1073_v7, %v27_v6 }
  0xa8   :  { %v1356_v62 = vsel %vm1045_vm0, 4294967295, %v1355_v62  ;;  %750 = vmatpush.bf16.msk.msra.mxu1 %vm1045_vm0, %v850_v44 }
  0xac   :  { %v265_v63 = vpop.permute.xlu1 %264 }
  0xad   :  { %vm303_vm2 = vcmp.eq.s32.totalorder %v265_v63, %v985_v39  ;;  %v164_v0 = vpop.permute.xlu0 %163 }
  0xae   :  { %vm1055_vm5 = vmpackc.low %vm304_vm1, %vm303_vm2  ;;  %vm200_vm6 = vcmp.eq.s32.totalorder %v164_v0, %v985_v39  ;;  %vm103_vm1 = vcmp.eq.s32.totalorder %v1073_v7, %v1077_v8  ;;  %vm104_vm2 = vcmp.eq.s32.totalorder %v1073_v7, %v1080_v9 }
  0xaf   :  { %v1358_v1 = vsel %vm1055_vm5, 4294967295, %v1357_v1  ;;  %vm711_vm7 = vmpackc.low %vm200_vm6, %vm199_vm3  ;;  %752 = vmatpush.bf16.msk.msra.mxu1 %vm1055_vm5, %v850_v44  ;;  %vm196_vm6 = vcmp.eq.s32.totalorder %v152_v10, %v985_v39 }
  0xb0   :  { %712 = vmatpush.bf16.msk.msra.mxu0 %vm711_vm7, %v850_v44  ;;  %786 = vmatpush.bf16.msk.msra.mxu3 %vm711_vm7, %v850_v44  ;;  %vm717_vm3 = vmpackc.low %vm92_vm14, %vm91_vm13  ;;  %vm47_vm13 = vcmp.eq.s32.totalorder %v1115_v16, %v27_v6 }
  0xb4   :  { %v158_v4 = vpop.permute.xlu1 %157 }
  0xb5   :  { %vm198_vm8 = vcmp.eq.s32.totalorder %v158_v4, %v985_v39  ;;  %v155_v5 = vpop.permute.xlu0 %154 }
  0xb6   :  { %vm197_vm9 = vcmp.eq.s32.totalorder %v155_v5, %v985_v39 }
  0xb7   :  { %vm713_vm10 = vmpackc.low %vm198_vm8, %vm197_vm9  ;;  %vm301_vm9 = vcmp.eq.s32.totalorder %v259_v2, %v985_v39 }
  0xb8   :  { %714 = vmatpush.bf16.msk.msra.mxu0 %vm713_vm10, %v850_v44  ;;  %787 = vmatpush.bf16.msk.msra.mxu3 %vm713_vm10, %v850_v44  ;;  %vm735_vm8 = vmpackc.low %vm104_vm2, %vm103_vm1  ;;  %vm93_vm2 = vcmp.eq.s32.totalorder %v1073_v7, %v28_v20 }
  0xbc   :  { %v149_v12 = vpop.permute.xlu1 %148 }
  0xbd   :  { %v262_v13 = vpop.permute.xlu0 %261  ;;  %vm195_vm7 = vcmp.eq.s32.totalorder %v149_v12, %v985_v39 }
  0xbe   :  { %vm302_vm10 = vcmp.eq.s32.totalorder %v262_v13, %v985_v39  ;;  %vm715_vm5 = vmpackc.low %vm196_vm6, %vm195_vm7  ;;  %vm105_vm6 = vcmp.eq.s32.totalorder %v1073_v7, %v40_v22  ;;  %vm106_vm7 = vcmp.eq.s32.totalorder %v1073_v7, %v41_v23 }
  0xbf   :  { %vm1100_vm0 = vmpackc.low %vm302_vm10, %vm301_vm9  ;;  %716 = vmatpush.bf16.msk.msra.mxu0 %vm715_vm5, %v850_v44  ;;  %788 = vmatpush.bf16.msk.msra.mxu3 %vm715_vm5, %v850_v44  ;;  %vm1363_vm9 = vnez %v1356_v62  ;;  %vm1364_vm10 = vnez %v1358_v1 }
  0xc0   :  { %754 = vmatpush.bf16.msk.msra.mxu1 %vm1100_vm0, %v850_v44 }
  0xc2   :  { %719 = vmatmul.msk.bf16.vlgmr.msra.gmra.mxu0 %vm717_vm3, %v1098_v14  ;;  %737 = vmatmul.msk.bf16.vlgmr.msra.gmra.mxu3 %vm735_vm8, %v1098_v14  ;;  %vm94_vm3 = vcmp.eq.s32.totalorder %v1073_v7, %v29_v21  ;;  %vm738_vm8 = vmpackc.low %vm106_vm7, %vm105_vm6  ;;  %vm51_vm7 = vcmp.eq.s32.totalorder %v1115_v16, %v31_v25 }
  0xc3   :  { %789 = vmatpush.bf16.msk.msrb.mxu3 %vm991_vm4, %v850_v44  ;;  %vm46_vm4 = vcmp.eq.s32.totalorder %v1115_v16, %v1066_v3 }
  0xc4   :  { %v256_v17 = vpop.permute.xlu1 %255 }
  0xc5   :  { %v253_v18 = vpop.permute.xlu0 %252  ;;  %vm300_vm5 = vcmp.eq.s32.totalorder %v256_v17, %v985_v39 }
  0xc6   :  { %vm299_vm14 = vcmp.eq.s32.totalorder %v253_v18, %v985_v39 }
  0xc7   :  { %790 = vmatpush.bf16.msk.msrb.mxu3 %vm1006_vm11, %v850_v44  ;;  %vm1127_vm1 = vmpackc.low %vm300_vm5, %vm299_vm14  ;;  %vm49_vm5 = vcmp.eq.s32.totalorder %v1115_v16, %v29_v21  ;;  %vm96_vm14 = vcmp.eq.s32.totalorder %v1073_v7, %v31_v25 }
  0xc8   :  { %756 = vmatpush.bf16.msk.msra.mxu1 %vm1127_vm1, %v850_v44  ;;  %vm757_vm11 = vmpackc.low %vm47_vm13, %vm46_vm4  ;;  %vm95_vm13 = vcmp.eq.s32.totalorder %v1073_v7, %v30_v24 }
  0xcb   :  { %791 = vmatpush.bf16.msk.msrb.mxu3 %vm1016_vm15, %v850_v44  ;;  %759 = vmatmul.msk.bf16.vlgmr.msra.gmra.mxu1 %vm757_vm11, %v1098_v14  ;;  %vm720_vm15 = vmpackc.low %vm94_vm3, %vm93_vm2  ;;  %vm58_vm11 = vcmp.eq.s32.totalorder %v1115_v16, %v1077_v8  ;;  %vm59_vm2 = vcmp.eq.s32.totalorder %v1115_v16, %v1080_v9 }
  0xcc   :  { %vm723_vm3 = vmpackc.low %vm96_vm14, %vm95_vm13  ;;  %vm53_vm13 = vcmp.eq.s32.totalorder %v1115_v16, %v33_v27 }
  0xcd   :  { %vm775_vm6 = vmpackc.low %vm59_vm2, %vm58_vm11  ;;  %vm99_vm11 = vcmp.eq.s32.totalorder %v1073_v7, %v34_v28  ;;  %vm100_vm2 = vcmp.eq.s32.totalorder %v1073_v7, %v35_v29 }
  0xcf   :  { %792 = vmatpush.bf16.msk.msrb.mxu3 %vm1034_vm12, %v850_v44  ;;  %vm48_vm12 = vcmp.eq.s32.totalorder %v1115_v16, %v28_v20 }
  0xd0   :  { %vm760_vm4 = vmpackc.low %vm49_vm5, %vm48_vm12 }
  0xd2   :  { %722 = vmatmul.msk.bf16.gmra.mxu0 %vm720_vm15, %v1098_v14  ;;  %740 = vmatmul.msk.bf16.gmra.mxu3 %vm738_vm8, %v1098_v14  ;;  %vm97_vm15 = vcmp.eq.s32.totalorder %v1073_v7, %v32_v26  ;;  %vm98_vm8 = vcmp.eq.s32.totalorder %v1073_v7, %v33_v27 }
  0xd3   :  { %793 = vmatpush.bf16.msk.msrb.mxu3 %vm1363_vm9, %v850_v44  ;;  %vm60_vm9 = vcmp.eq.s32.totalorder %v1115_v16, %v40_v22  ;;  %vm726_vm12 = vmpackc.low %vm98_vm8, %vm97_vm15  ;;  %vm102_vm15 = vcmp.eq.s32.totalorder %v1073_v7, %v37_v31 }
  0xd7   :  { %794 = vmatpush.bf16.msk.msrb.mxu3 %vm1364_vm10, %v850_v44  ;;  %vm61_vm10 = vcmp.eq.s32.totalorder %v1115_v16, %v41_v23 }
  0xd8   :  { %vm778_vm5 = vmpackc.low %vm61_vm10, %vm60_vm9  ;;  %vm56_vm9 = vcmp.eq.s32.totalorder %v1115_v16, %v36_v30  ;;  %vm57_vm10 = vcmp.eq.s32.totalorder %v1115_v16, %v37_v31 }
  0xdb   :  { %795 = vmatpush.bf16.msk.msrb.mxu3 %vm1100_vm0, %v850_v44  ;;  %762 = vmatmul.msk.bf16.gmra.mxu1 %vm760_vm4, %v1098_v14  ;;  %vm50_vm0 = vcmp.eq.s32.totalorder %v1115_v16, %v30_v24  ;;  %vm52_vm4 = vcmp.eq.s32.totalorder %v1115_v16, %v32_v26 }
  0xdc   :  { %vm766_vm14 = vmpackc.low %vm53_vm13, %vm52_vm4  ;;  %vm575_vm4 = vcmask 1040384  }
  0xdf   :  { %796 = vmatpush.bf16.msk.msrb.mxu3 %vm1127_vm1, %v850_v44  ;;  %vm763_vm1 = vmpackc.low %vm51_vm7, %vm50_vm0  ;;  %vm55_vm0 = vcmp.eq.s32.totalorder %v1115_v16, %v35_v29 }
  0xe2   :  { %725 = vmatmul.msk.bf16.gmra.mxu0 %vm723_vm3, %v1098_v14  ;;  %777 = vmatmul.msk.bf16.vlgmr.msrb.gmra.mxu3 %vm775_vm6, %v1098_v14  ;;  %vm729_vm3 = vmpackc.low %vm100_vm2, %vm99_vm11  ;;  %vm54_vm6 = vcmp.eq.s32.totalorder %v1115_v16, %v34_v28 }
  0xe3   :  { %vm769_vm7 = vmpackc.low %vm55_vm0, %vm54_vm6 }
  0xeb   :  { %765 = vmatmul.msk.bf16.gmra.mxu1 %vm763_vm1, %v1098_v14  ;;  %vm101_vm1 = vcmp.eq.s32.totalorder %v1073_v7, %v36_v30 }
  0xec   :  { %vm732_vm8 = vmpackc.low %vm102_vm15, %vm101_vm1 }
  0xf2   :  { %728 = vmatmul.msk.bf16.gmra.mxu0 %vm726_vm12, %v1098_v14  ;;  %780 = vmatmul.msk.bf16.gmra.mxu3 %vm778_vm5, %v1098_v14  ;;  %vm772_vm12 = vmpackc.low %vm57_vm10, %vm56_vm9  ;;  %vm554_vm5 = vcmp.lt.s32.totalorder %v985_v39, 16 }
  0xfb   :  { %768 = vmatmul.msk.bf16.gmra.mxu1 %vm766_vm14, %v1098_v14 }
 0x102   :  { %731 = vmatmul.msk.bf16.gmra.mxu0 %vm729_vm3, %v1098_v14 }
 0x10b   :  { %771 = vmatmul.msk.bf16.gmra.mxu1 %vm769_vm7, %v1098_v14 }
 0x112   :  { %734 = vmatmul.msk.bf16.gmra.mxu0 %vm732_vm8, %v1098_v14 }
 0x11b   :  { %774 = vmatmul.msk.bf16.gmra.mxu1 %vm772_vm12, %v1098_v14 }
 0x13f   :  { %v348_v32 = vpop.f32.mrf.mxu0 }
 0x145   :  { %v378_v33 = vpop.f32.mrf.mxu3 }
 0x147   :  { %v350_v34 = vpop.f32.mrf.mxu0 }
 0x148   :  { %v397_v35 = vpop.f32.mrf.mxu1 }
 0x149   :  { %v1206_v36 = vadd.f32 %v397_v35, %v348_v32 }
 0x14d   :  { %v380_v37 = vpop.f32.mrf.mxu3 }
 0x14f   :  { %v353_v38 = vpop.f32.mrf.mxu0 }
 0x150   :  { %v399_v40 = vpop.f32.mrf.mxu1 }
 0x151   :  { %v1224_v2 = vadd.f32 %v399_v40, %v350_v34 }
 0x153   :  { %v445_v5 = vadd.f32 %v1224_v2, %v1206_v36 }
 0x155   :  { %v383_v41 = vpop.f32.mrf.mxu3 }
 0x157   :  { %v355_v42 = vpop.f32.mrf.mxu0 }
 0x158   :  { %v402_v43 = vpop.f32.mrf.mxu1 }
 0x159   :  { %v1226_v4 = vadd.f32 %v402_v43, %v353_v38 }
 0x15b   :  { %v446_v8 = vadd.f32 %v445_v5, %v1226_v4 }
 0x15d   :  { %v385_v44 = vpop.f32.mrf.mxu3 }
 0x15f   :  { %v358_v45 = vpop.f32.mrf.mxu0 }
 0x160   :  { %v404_v46 = vpop.f32.mrf.mxu1 }
 0x161   :  { %v1230_v6 = vadd.f32 %v404_v46, %v355_v42  ;;  %v437_v46 = vpack.c.bf16 %v1224_v2, %v1206_v36 }
 0x163   :  { %v447_v10 = vadd.f32 %v446_v8, %v1230_v6  ;;  %v438_v43 = vpack.c.bf16 %v1230_v6, %v1226_v4 }
 0x165   :  { %v427_v47 = vpop.f32.mrf.mxu3 }
 0x166   :  { %v1218_v62 = vadd.f32 %v427_v47, %v378_v33 }
 0x167   :  { %v360_v48 = vpop.f32.mrf.mxu0 }
 0x168   :  { %v407_v49 = vpop.f32.mrf.mxu1 }
 0x169   :  { %v1233_v9 = vadd.f32 %v407_v49, %v358_v45 }
 0x16b   :  { %v448_v12 = vadd.f32 %v447_v10, %v1233_v9 }
 0x16d   :  { %v429_v50 = vpop.f32.mrf.mxu3 }
 0x16e   :  { %v1212_v59 = vadd.f32 %v429_v50, %v380_v37  ;;  %v851_v50 = vmov 0.0  }
 0x16f   :  { %v363_v51 = vpop.f32.mrf.mxu0 }
 0x170   :  { %v409_v52 = vpop.f32.mrf.mxu1  ;;  %v443_v0 = vpack.c.bf16 %v1212_v59, %v1218_v62 }
 0x171   :  { %v1236_v11 = vadd.f32 %v409_v52, %v360_v48 }
 0x173   :  { %v449_v15 = vadd.f32 %v448_v12, %v1236_v11 }
 0x175   :  { %v432_v53 = vpop.f32.mrf.mxu3 }
 0x176   :  { %v1208_v57 = vadd.f32 %v432_v53, %v383_v41  ;;  %v439_v41 = vpack.c.bf16 %v1236_v11, %v1233_v9 }
 0x177   :  { %v365_v54 = vpop.f32.mrf.mxu0 }
 0x178   :  { %v412_v55 = vpop.f32.mrf.mxu1 }
 0x179   :  { %v1239_v13 = vadd.f32 %v412_v55, %v363_v51  ;;  %v1279_v51 = vsel %vm554_vm5, 1.0, %v851_v50 }
 0x17b   :  { %v450_v18 = vadd.f32 %v449_v15, %v1239_v13 }
 0x17d   :  { %v434_v56 = vpop.f32.mrf.mxu3 }
 0x17e   :  { %v1210_v58 = vadd.f32 %v434_v56, %v385_v44 }
 0x17f   :  { %v368_v63 = vpop.f32.mrf.mxu0 }
 0x180   :  { %v414_v60 = vpop.f32.mrf.mxu1  ;;  %v1216_v61 = vpack.c.bf16 %v1210_v58, %v1208_v57 }
 0x181   :  { %v1242_v16 = vadd.f32 %v414_v60, %v365_v54 }
 0x182   :  { %466 = vmatpush.bf16.msra.mxu2 %v1216_v61  ;;  %797 = vmatpush.bf16.msra.mxu3 %v1216_v61 }
 0x183   :  { %v451_v20 = vadd.f32 %v450_v18, %v1242_v16  ;;  %v440_v37 = vpack.c.bf16 %v1242_v16, %v1239_v13 }
 0x186   :  { %467 = vmatpush.bf16.msra.mxu2 %v443_v0  ;;  %798 = vmatpush.bf16.msra.mxu3 %v443_v0 }
 0x187   :  { %v370_v3 = vpop.f32.mrf.mxu0 }
 0x188   :  { %v417_v1 = vpop.f32.mrf.mxu1 }
 0x189   :  { %v1245_v19 = vadd.f32 %v417_v1, %v368_v63 }
 0x18b   :  { %v452_v22 = vadd.f32 %v451_v20, %v1245_v19 }
 0x18f   :  { %v373_v14 = vpop.f32.mrf.mxu0 }
 0x190   :  { %v419_v7 = vpop.f32.mrf.mxu1 }
 0x191   :  { %v1248_v21 = vadd.f32 %v419_v7, %v370_v3 }
 0x193   :  { %v453_v24 = vadd.f32 %v452_v22, %v1248_v21  ;;  %v441_v33 = vpack.c.bf16 %v1248_v21, %v1245_v19 }
 0x197   :  { %v375_v25 = vpop.f32.mrf.mxu0 }
 0x198   :  { %v422_v17 = vpop.f32.mrf.mxu1 }
 0x199   :  { %v1251_v23 = vadd.f32 %v422_v17, %v373_v14 }
 0x19b   :  { %v454_v27 = vadd.f32 %v453_v24, %v1251_v23 }
 0x1a0   :  { %v424_v26 = vpop.f32.mrf.mxu1 }
 0x1a1   :  { %v1255_v28 = vadd.f32 %v424_v26, %v375_v25 }
 0x1a3   :  { %v455_v29 = vadd.f32 %v454_v27, %v1255_v28  ;;  %v442_v30 = vpack.c.bf16 %v1255_v28, %v1251_v23 }
 0x1a5   :  { %v456_v31 = vadd.f32 %v455_v29, %v1218_v62  ;;  %468 = vmatpush.bf16.msra.mxu2 %v442_v30  ;;  %799 = vmatpush.bf16.msra.mxu3 %v442_v30 }
 0x1a7   :  { %v457_v32 = vadd.f32 %v456_v31, %v1212_v59 }
 0x1a9   :  { %v458_v34 = vadd.f32 %v457_v32, %v1208_v57  ;;  %469 = vmatpush.bf16.msra.mxu2 %v441_v33  ;;  %800 = vmatpush.bf16.msra.mxu3 %v441_v33 }
 0x1ab   :  { %v459_v35 = vadd.f32 %v458_v34, %v1210_v58 }
 0x1ad   :  { %v460_v38 = vrot.slane %v459_v35, 4  ;;  %470 = vmatpush.bf16.msra.mxu2 %v440_v37  ;;  %801 = vmatpush.bf16.msra.mxu3 %v440_v37 }
 0x1af   :  { %v461_v40 = vadd.f32 %v460_v38, %v459_v35 }
 0x1b1   :  { %v462_v42 = vrot.slane %v461_v40, 2  ;;  %471 = vmatpush.bf16.msra.mxu2 %v439_v41  ;;  %802 = vmatpush.bf16.msra.mxu3 %v439_v41 }
 0x1b3   :  { %v463_v44 = vadd.f32 %v462_v42, %v461_v40 }
 0x1b5   :  { %472 = vmatpush.bf16.msra.mxu2 %v438_v43  ;;  %803 = vmatpush.bf16.msra.mxu3 %v438_v43  ;;  %v464_v45 = vrot.slane %v463_v44, 1 }
 0x1b7   :  { %v1274_v47 = vadd.f32 %v464_v45, %v463_v44 }
 0x1b9   :  { %473 = vmatpush.bf16.msra.mxu2 %v437_v46  ;;  %804 = vmatpush.bf16.msra.mxu3 %v437_v46  ;;  %v568_v48 = vadd.f32 1e-20, %v1274_v47 }
 0x1bb   :  { %827 = vlog2.f32 %v568_v48 }
 0x1bc   :  { %474 = vmatmul.bf16.vlgmr.msra.gmra.mxu2 %v437_v46  ;;  %504 = vmatmul.bf16.vlgmr.msra.gmra.mxu3 %v443_v0 }
 0x1c1   :  { %v828_v49 = vpop.eup %827 }
 0x1c2   :  { %v1281_v52 = vmul.f32 0.6931472, %v828_v49 }
 0x1c4   :  { %v1285_v53 = vmul.f32 %v1281_v52, %v1279_v51 }
 0x1c6   :  { %v576_v54 = vsel %vm575_vm4, %v1285_v53, 0.0  ;;  %v586_v55 = vmul.f32 %v1285_v53, %v1281_v52 }
 0x1c7   :  { %577 = vadd.xlane.f32.xlu2 %v576_v54 }
 0x1c8   :  { %v587_v56 = vsel %vm575_vm4, %v586_v55, 0.0 }
 0x1c9   :  { %588 = vadd.xlane.f32.xlu0 %v587_v56 }
 0x1cc   :  { %479 = vmatmul.bf16.gmra.mxu2 %v438_v43  ;;  %509 = vmatmul.bf16.gmra.mxu3 %v1216_v61 }
 0x1dc   :  { %484 = vmatmul.bf16.gmra.mxu2 %v439_v41 }
 0x1ec   :  { %489 = vmatmul.bf16.gmra.mxu2 %v440_v37 }
 0x1fc   :  { %494 = vmatmul.bf16.gmra.mxu2 %v441_v33 }
 0x20c   :  { %499 = vmatmul.bf16.gmra.mxu2 %v442_v30 }
 0x23a   :  { %v578_v60 = vpop.xlane.xlu2 %577 }
 0x23b   :  { %v579_v63 = vrot.slane %v578_v60, 4 }
 0x23c   :  { %v589_v0 = vpop.xlane.xlu0 %588 }
 0x23d   :  { %v580_v1 = vadd.f32 %v579_v63, %v578_v60  ;;  %v590_v3 = vrot.slane %v589_v0, 4 }
 0x23f   :  { %v581_v5 = vrot.slane %v580_v1, 2  ;;  %v591_v7 = vadd.f32 %v590_v3, %v589_v0  ;;  %v475_v8 = vpop.f32.mrf.mxu2  ;;  %v505_v30 = vpop.f32.mrf.mxu3 }
 0x240   :  { %v515_v33 = vmul.f32 %v475_v8, %v1206_v36 }
 0x241   :  { %v592_v10 = vrot.slane %v591_v7, 2  ;;  %v582_v12 = vadd.f32 %v581_v5, %v580_v1 }
 0x243   :  { %v583_v14 = vrot.slane %v582_v12, 1  ;;  %v593_v15 = vadd.f32 %v592_v10, %v591_v7 }
 0x245   :  { %v584_v17 = vadd.f32 %v583_v14, %v582_v12  ;;  %v594_v18 = vrot.slane %v593_v15, 1 }
 0x247   :  { %v477_v20 = vpop.f32.mrf.mxu2  ;;  %805 = vpush %v584_v17  ;;  %v595_v61 = vadd.f32 %v594_v18, %v593_v15  ;;  %v507_v42 = vpop.f32.mrf.mxu3 }
 0x248   :  { %v516_v32 = vmul.f32 %v477_v20, %v1224_v2 }
 0x249   :  { %807 = vpush %v595_v61 }
 0x24a   :  { %v531_v35 = vadd.f32 %v516_v32, %v515_v33 }
 0x24f   :  { %v480_v22 = vpop.f32.mrf.mxu2  ;;  %v510_v55 = vpop.f32.mrf.mxu3 }
 0x250   :  { %v517_v34 = vmul.f32 %v480_v22, %v1226_v4 }
 0x252   :  { %v532_v40 = vadd.f32 %v531_v35, %v517_v34 }
 0x257   :  { %v482_v24 = vpop.f32.mrf.mxu2  ;;  %v512_v5 = vpop.f32.mrf.mxu3 }
 0x258   :  { %v518_v37 = vmul.f32 %v482_v24, %v1230_v6 }
 0x25a   :  { %v533_v43 = vadd.f32 %v532_v40, %v518_v37 }
 0x25f   :  { %v485_v25 = vpop.f32.mrf.mxu2 }
 0x260   :  { %v519_v41 = vmul.f32 %v485_v25, %v1233_v9 }
 0x262   :  { %v534_v45 = vadd.f32 %v533_v43, %v519_v41 }
 0x267   :  { %v487_v26 = vpop.f32.mrf.mxu2 }
 0x268   :  { %v520_v44 = vmul.f32 %v487_v26, %v1236_v11 }
 0x26a   :  { %v535_v48 = vadd.f32 %v534_v45, %v520_v44 }
 0x26f   :  { %v490_v27 = vpop.f32.mrf.mxu2 }
 0x270   :  { %v521_v46 = vmul.f32 %v490_v27, %v1239_v13  ;;  %v527_v13 = vmul.f32 %v505_v30, %v1218_v62 }
 0x272   :  { %v536_v49 = vadd.f32 %v535_v48, %v521_v46 }
 0x277   :  { %v492_v29 = vpop.f32.mrf.mxu2 }
 0x278   :  { %v522_v2 = vmul.f32 %v492_v29, %v1242_v16  ;;  %v528_v16 = vmul.f32 %v507_v42, %v1212_v59  ;;  %s1320_s16 = spop %805 }
 0x279   :  { %s620_s19 = smul.f32 %s1320_s16, %s1320_s16 }
 0x27a   :  { %v537_v54 = vadd.f32 %v536_v49, %v522_v2  ;;  %s1322_s17 = spop %807 }
 0x27b   :  { %s619_s18 = smul.f32 16.0, %s1322_s17 }
 0x27d   :  { %s621_s20 = ssub.f32 %s619_s18, %s620_s19 }
 0x27f   :  { %v495_v31 = vpop.f32.mrf.mxu2 }
 0x280   :  { %v523_v4 = vmul.f32 %v495_v31, %v1245_v19  ;;  %v529_v19 = vmul.f32 %v510_v55, %v1208_v57 }
 0x282   :  { %v538_v56 = vadd.f32 %v537_v54, %v523_v4 }
 0x287   :  { %v497_v38 = vpop.f32.mrf.mxu2 }
 0x288   :  { %v524_v6 = vmul.f32 %v497_v38, %v1248_v21  ;;  %v530_v21 = vmul.f32 %v512_v5, %v1210_v58 }
 0x28a   :  { %v539_v60 = vadd.f32 %v538_v56, %v524_v6 }
 0x28f   :  { %v500_v36 = vpop.f32.mrf.mxu2 }
 0x290   :  { %v525_v9 = vmul.f32 %v500_v36, %v1251_v23 }
 0x292   :  { %v540_v11 = vadd.f32 %v539_v60, %v525_v9 }
 0x297   :  { %v502_v63 = vpop.f32.mrf.mxu2 }
 0x298   :  { %v526_v0 = vmul.f32 %v502_v63, %v1255_v28 }
 0x29a   :  { %v541_v1 = vadd.f32 %v540_v11, %v526_v0 }
 0x29c   :  { %v542_v3 = vadd.f32 %v541_v1, %v527_v13 }
 0x29e   :  { %v543_v7 = vadd.f32 %v542_v3, %v528_v16 }
 0x2a0   :  { %v544_v8 = vadd.f32 %v543_v7, %v529_v19 }
 0x2a2   :  { %v545_v10 = vadd.f32 %v544_v8, %v530_v21 }
 0x2a4   :  { %v546_v23 = vrot.slane %v545_v10, 4 }
 0x2a6   :  { %v547_v12 = vadd.f32 %v546_v23, %v545_v10 }
 0x2a8   :  { %v548_v14 = vrot.slane %v547_v12, 2 }
 0x2aa   :  { %v549_v15 = vadd.f32 %v548_v14, %v547_v12 }
 0x2ac   :  { %v550_v17 = vrot.slane %v549_v15, 1 }
 0x2ae   :  { %v551_v28 = vadd.f32 %v550_v17, %v549_v15 }
 0x2b0   :  { %v552_v18 = vmul.f32 0.5, %v551_v28 }
 0x2b2   :  { %v1310_v62 = vadd.f32 %v552_v18, %v1274_v47  ;;  %v556_v47 = vld [vmem:[%s1343_s5] sm:$0xff] }
 0x2b4   :  { %v571_v59 = vadd.f32 1e-20, %v1310_v62 }
 0x2b6   :  { %829 = vlog2.f32 %v571_v59 }
 0x2bc   :  { %v830_v20 = vpop.eup %829 }
 0x2bd   :  { %v573_v57 = vmul.f32 0.6931472, %v830_v20 }
 0x2bf   :  { %v608_v61 = vmul.f32 %v1285_v53, %v573_v57  ;;  %v597_v58 = vmul.f32 %v573_v57, %v1279_v51  ;;  %v625_v51 = vstv %s621_s20 }
 0x2c0   :  { %831 = vrcp.f32 %v625_v51  ;;  %v637_v42 = vand.u32 2147483648, %v625_v51  ;;  %vm631_vm14 = vweird.f32 %v625_v51  ;;  %v635_v45 = vand.u32 2147483647, %v625_v51 }
 0x2c1   :  { %v609_v22 = vsel %vm575_vm4, %v608_v61, 0.0  ;;  %v598_v24 = vsel %vm575_vm4, %v597_v58, 0.0 }
 0x2c2   :  { %610 = vadd.xlane.f32.xlu2 %v609_v22  ;;  %599 = vadd.xlane.f32.xlu1 %v598_v24  ;;  %v638_v36 = vor.u32 1.1754944e-38, %v637_v42  ;;  %vm636_vm2 = vcmp.eq.f32.partialorder %v635_v45, 8.507059e+37 }
 0x2c6   :  { %v832_v53 = vpop.eup %831 }
 0x2c7   :  { %v627_v25 = vmul.f32 %v832_v53, %v625_v51  ;;  %vm632_vm13 = vweird.f32 %v832_v53 }
 0x2c8   :  { %vm633_vm11 = vmor %vm631_vm14, %vm632_vm13 }
 0x2c9   :  { %v628_v26 = vsub.f32 1.0, %v627_v25 }
 0x2cb   :  { %v629_v34 = vmul.f32 %v832_v53, %v628_v26 }
 0x2cd   :  { %v630_v41 = vadd.f32 %v832_v53, %v629_v34 }
 0x2cf   :  { %v634_v2 = vsel %vm633_vm11, %v832_v53, %v630_v41 }
 0x2d0   :  { %v639_v49 = vsel %vm636_vm2, %v638_v36, %v634_v2 }
 0x2da   :  { %558 = vperm.xlu2 %823, %v556_v47  }
 0x335   :  { %v611_v27 = vpop.xlane.xlu2 %610  ;;  %v600_v29 = vpop.xlane.xlu1 %599 }
 0x336   :  { %v612_v30 = vrot.slane %v611_v27, 4  ;;  %v601_v31 = vrot.slane %v600_v29, 4 }
 0x338   :  { %v613_v32 = vadd.f32 %v612_v30, %v611_v27  ;;  %v602_v33 = vadd.f32 %v601_v31, %v600_v29 }
 0x33a   :  { %v614_v35 = vrot.slane %v613_v32, 2  ;;  %v603_v37 = vrot.slane %v602_v33, 2 }
 0x33c   :  { %v604_v38 = vadd.f32 %v603_v37, %v602_v33  ;;  %v615_v40 = vadd.f32 %v614_v35, %v613_v32 }
 0x33d   :  { %v559_v4 = vpop.permute.xlu2 %558 }
 0x33e   :  { %v605_v43 = vrot.slane %v604_v38, 1  ;;  %v616_v44 = vrot.slane %v615_v40, 1  ;;  %vm560_vm3 = vcmp.eq.s32.totalorder %v559_v4, %v985_v39 }
 0x33f   :  { %v561_v54 = vsel %vm560_vm3, 1.0, %v851_v50 }
 0x340   :  { %v606_v46 = vadd.f32 %v605_v43, %v604_v38  ;;  %v617_v48 = vadd.f32 %v616_v44, %v615_v40  ;;  %v562_v6 = vrot.slane %v561_v54, 4 }
 0x342   :  { %809 = vpush %v606_v46  ;;  %v563_v55 = vadd.f32 %v562_v6, %v561_v54 }
 0x343   :  { %811 = vpush %v617_v48 }
 0x344   :  { %813 = vpush %v639_v49  ;;  %v564_v56 = vrot.slane %v563_v55, 2 }
 0x346   :  { %v565_v9 = vadd.f32 %v564_v56, %v563_v55 }
 0x348   :  { %v566_v60 = vrot.slane %v565_v9, 1 }
 0x34a   :  { %v567_v63 = vadd.f32 %v566_v60, %v565_v9 }
 0x34c   :  { %vm662_vm6 = vcmp.gt.f32.partialorder %v567_v63, 0.0 }
 0x34d   :  { %v663_v39 = vsel %vm662_vm6, %v1281_v52, 0.0 }
 0x373   :  { %s810_s5 = spop %809 }
 0x374   :  { %s622_s21 = smul.f32 %s810_s5, %s1322_s17  ;;  %s812_s22 = spop %811 }
 0x375   :  { %s643_s23 = smul.f32 %s810_s5, %s1320_s16  ;;  %s814_s27 = spop %813 }
 0x376   :  { %s623_s24 = smul.f32 %s812_s22, %s1320_s16 }
 0x377   :  { %s642_s25 = smul.f32 16.0, %s812_s22 }
 0x378   :  { %s624_s26 = ssub.f32 %s622_s21, %s623_s24 }
 0x379   :  { %s644_s28 = ssub.f32 %s642_s25, %s643_s23 }
 0x37a   :  { %s641_s29 = smul.f32 %s814_s27, %s624_s26 }
 0x37b   :  { %s661_s30 = smul.f32 %s814_s27, %s644_s28 }
 0x37c   :  { %v666_v0 = vstv %s641_s29 }
 0x37d   :  { %v664_v50 = vstv %s661_s30 }
 0x37e   :  { %v665_v11 = vmul.f32 %v664_v50, %v663_v39 }
 0x380   :  { %v667_v13 = vadd.f32 %v666_v0, %v665_v11 }
 0x382   :  { %v668_v1 = vmul.f32 1.442695, %v667_v13 }
 0x384   :  { %833 = vpow2.f32 %v668_v1 }
 0x38a   :  { %v834_v16 = vpop.eup %833 }
 0x38b   :  { %v670_v3 = vsub.f32 %v834_v16, %v1310_v62 }
 0x38d   :  { %v671_v5 = vsel %vm662_vm6, %v670_v3, 0.0 }
 0x38e   :  { %v672_v19 = vmul.f32 %v671_v5, %v567_v63 }
 0x390   :  { %v673_v7 = vmul.f32 %v672_v19, %v671_v5 }
 0x392   :  { %v674_v21 = vsel %vm575_vm4, %v673_v7, 0.0 }
 0x393   :  { %675 = vadd.xlane.f32.xlu0 %v674_v21 }
 0x406   :  { %v676_v8 = vpop.xlane.xlu0 %675 }
 0x407   :  { %v677_v10 = vrot.slane %v676_v8, 4 }
 0x409   :  { %v678_v23 = vadd.f32 %v677_v10, %v676_v8 }
 0x40b   :  { %v679_v12 = vrot.slane %v678_v23, 2 }
 0x40d   :  { %v680_v52 = vadd.f32 %v679_v12, %v678_v23 }
 0x40f   :  { %v681_v14 = vrot.slane %v680_v52, 1 }
 0x411   :  { %v682_v15 = vadd.f32 %v681_v14, %v680_v52 }
 0x413   :  { %815 = vpush %v682_v15 }
 0x444   :  { %s816_s10 = spop %815 }
 0x445   :  { %685 = sst [smem:[#allocation2]] %s816_s10 }
 0x446   :  { %694 = dma.smem_to_hbm %s852_s11, 16, %s692_s9, [#allocation3]  }
 0x447   :  { %847 = dma.done.wait [#allocation3], 16  }
 0x448   :  { %848 = vsyncadd [#allocation3], 4294967280 }
 0x449   :  { %699 = sfence }
 0x44a   :  { %700 = vsyncpa [#allocation3], 1 }

</bundles_post_ra>
